<compile_context>
chip_gen: v7x
topology: tpu7x:2x2x1
jax: 0.10.0
libtpu: 0.0.40
codegen_flags: <defaults>
</compile_context>

<pallas_src>
import functools

import jax
import jax.numpy as jnp
from jax import lax
from jax.experimental import pallas as pl
from jax.experimental.pallas import tpu as pltpu


_SLICING_FACTOR = 16
_NEG_SLOPE = 0.2


# ----------------------------------------------------------------------------
# Fused kernel
#   p1_ref   : (4, 64, Mt)  bf16   im2col of conv1, grouped per conv2 tap
#   w_ref    : (16, 128)    bf16   [ w1 (16,64) | w2 (16,64, tap-major cols) ]
#   bias_ref : (16, 2)      f32    [ b1 | b2 ] as lane-broadcast columns
#   out2_ref : (16, Mt)     f32    conv2 output slab (cols = (b, ho2, wo2))
#   skip_ref : (4, 16, Mt)  f32    conv1 output slab (tap-major)
#   h2_ref   : (64, Mt)     bf16   VMEM scratch staging conv2's K=64 operand
# ----------------------------------------------------------------------------
def _fused_downsample_kernel(p1_ref, w_ref, bias_ref, out2_ref, skip_ref,
                             h2_ref, *, negative_slope):
    n_taps = p1_ref.shape[0]              # 4
    c_out = w_ref.shape[0]                # 16
    k1 = w_ref.shape[1] // 2              # 64

    w1 = w_ref[:, :k1]                    # (16, 64) bf16
    w2 = w_ref[:, k1:]                    # (16, 64) bf16, cols = (kh2, kw2, c_in)
    b1 = bias_ref[:, 0:1]                 # (16, 1) f32, lane-broadcast
    b2 = bias_ref[:, 1:2]

    # conv1 per conv2-tap block (static unroll of 4) + bias + LeakyReLU(0.2)
    for t in range(n_taps):
        h = jnp.dot(w1, p1_ref[t], preferred_element_type=jnp.float32) + b1
        h = jnp.maximum(h, negative_slope * h)             # LeakyReLU, 2 VALU ops
        skip_ref[t] = h.astype(skip_ref.dtype)             # skip-feature writeback
        h2_ref[t * c_out:(t + 1) * c_out, :] = h.astype(h2_ref.dtype)

    # conv2: one K=64 MXU push on the staged (64, Mt) operand
    out2 = jnp.dot(w2, h2_ref[...], preferred_element_type=jnp.float32) + b2
    out2_ref[...] = out2.astype(out2_ref.dtype)


def _pick_tile_m2(m2):
    """Largest lane-dense tile (<=2048, multiple of 128) that divides M2."""
    if m2 <= 2048:
        return m2
    for t in range(2048, 127, -128):
        if m2 % t == 0:
            return t
    # TODO(synk): ragged M2 (no 128-multiple divisor) would need cdiv + masked tail.
    return m2


def _fused_downsample_call(p1, w_slab, biases):
    n_taps, k1, m2 = p1.shape
    c_out = w_slab.shape[0]
    tile = _pick_tile_m2(m2)
    grid = (m2 // tile,)

    # Advisory cost for XLA scheduling around the custom call.
    flops = 2 * c_out * k1 * (n_taps * m2) + 2 * c_out * (n_taps * c_out) * m2
    bytes_accessed = (p1.size * p1.dtype.itemsize
                      + w_slab.size * w_slab.dtype.itemsize
                      + biases.size * biases.dtype.itemsize
                      + (n_taps * c_out * m2 + c_out * m2) * 4)
    cost = pl.CostEstimate(flops=flops, transcendentals=0,
                           bytes_accessed=bytes_accessed)

    # VMEM: double-buffered input/outputs + scratch + small weight/bias padding.
    per_tile = (2 * n_taps * k1 * tile * p1.dtype.itemsize     # p1 tiles
                + 2 * n_taps * c_out * tile * 4                 # skip tiles
                + 2 * c_out * tile * 4                          # out2 tiles
                + n_taps * c_out * tile * 2                     # h2 scratch
                + 64 * 1024)                                    # weights/bias pads
    vmem_limit = int(min(48 << 20, max(4 * per_tile, 8 << 20)))

    kernel = functools.partial(_fused_downsample_kernel,
                               negative_slope=_NEG_SLOPE)
    return pl.pallas_call(
        kernel,
        out_shape=(
            jax.ShapeDtypeStruct((c_out, m2), jnp.float32),          # conv2 slab
            jax.ShapeDtypeStruct((n_taps, c_out, m2), jnp.float32),  # conv1 slab
        ),
        grid_spec=pltpu.PrefetchScalarGridSpec(
            num_scalar_prefetch=0,
            grid=grid,
            in_specs=[
                pl.BlockSpec((n_taps, k1, tile), lambda i: (0, 0, i)),
                pl.BlockSpec((c_out, 2 * k1), lambda i: (0, 0)),     # resident
                pl.BlockSpec((c_out, 2), lambda i: (0, 0)),          # resident
            ],
            out_specs=(
                pl.BlockSpec((c_out, tile), lambda i: (0, i)),
                pl.BlockSpec((n_taps, c_out, tile), lambda i: (0, 0, i)),
            ),
            scratch_shapes=[pltpu.VMEM((n_taps * c_out, tile), jnp.bfloat16)],
        ),
        compiler_params=pltpu.CompilerParams(
            dimension_semantics=("parallel",),
            vmem_limit_bytes=vmem_limit,
        ),
        cost_estimate=cost,
    )(p1, w_slab, biases)


# ----------------------------------------------------------------------------
# Module forward (mirrors DownsampleCNN.forward)
# ----------------------------------------------------------------------------
def downsample_cnn_forward(pred_monoFromMem, params,
                           *, compute_dtype=jnp.bfloat16):
    """pred_monoFromMem: (B, H, W, C) with C*16 == 16 and H % 16 == 0.

    Returns (out_flat, [skip1]) matching the module: out_flat is the
    NCHW-flattened conv2 output (B, 16*Ho2*Wo2); skip1 is the conv1 output in
    NCHW (== skip_feats[:-1][::-1]).
    """
    B, H, W, C = pred_monoFromMem.shape
    assert H % _SLICING_FACTOR == 0, "H must be divisible by 16"
    C1 = C * _SLICING_FACTOR
    H1 = H // _SLICING_FACTOR
    # permute(0,3,1,2) + view + reshape of the module == pure layout change
    x = jnp.transpose(pred_monoFromMem, (0, 3, 1, 2)).reshape(B, C1, H1, W)

    # TODO(synk): general floor-division sizes of strided convs not implemented.
    assert H1 % 4 == 0 and W % 4 == 0, "H/16 and W must be divisible by 4"
    Ho2, Wo2 = H1 // 4, W // 4            # conv2 output spatial size
    Ho1, Wo1 = H1 // 2, W // 2            # conv1 output spatial size
    M2 = B * Ho2 * Wo2

    w1, b1 = params["w1"], params["b1"]   # (16,16,2,2), (16,)
    w2, b2 = params["w2"], params["b2"]
    C_out1, C_out2 = w1.shape[0], w2.shape[0]
    assert C1 == w1.shape[1] == 16 and C_out1 == w2.shape[1] == 16 and C_out2 == 16

    # --- trace-time layout prep (fuses under jit) ----------------------------
    # Cast BEFORE the im2col so the materialized copy and the kernel's dominant
    # DMA are bf16 (half bytes).
    xb = x.astype(compute_dtype)
    # conv1 im2col grouped per conv2 tap: (tap=(kh2,kw2), K=(c1,kh1,kw1), M2=(b,ho2,wo2))
    p1 = (xb.reshape(B, C1, Ho2, 2, 2, Wo2, 2, 2)
            .transpose(3, 6, 1, 4, 7, 0, 2, 5)
            .reshape(4, C1 * 4, M2))
    # TODO(synk): at production sizes fold this im2col into the kernel's input
    # path (memory_space=pl.ANY + manual DMA) to avoid the HBM round trip.

    w1_mat = w1.reshape(C_out1, C1 * 4).astype(compute_dtype)               # (16, 64)
    w2_mat = jnp.transpose(w2, (0, 2, 3, 1)).reshape(C_out2, 4 * C_out1)    # tap-major cols
    w_slab = jnp.concatenate([w1_mat, w2_mat.astype(compute_dtype)], axis=1)  # (16, 128)
    biases = jnp.stack([b1, b2], axis=1).astype(jnp.float32)                # (16, 2)

    out2_slab, skip_slab = _fused_downsample_call(p1, w_slab, biases)

    # --- wrapper-side layout plumbing on the small outputs -------------------
    out_flat = (out2_slab.reshape(C_out2, B, Ho2 * Wo2)
                .transpose(1, 0, 2)
                .reshape(B, C_out2 * Ho2 * Wo2))
    skip1 = (skip_slab.reshape(2, 2, C_out1, B, Ho2, Wo2)
             .transpose(3, 2, 4, 0, 5, 1)          # (b, c, ho2, kh2, wo2, kw2)
             .reshape(B, C_out1, Ho1, Wo1))
    return out_flat, [skip1]


# ----------------------------------------------------------------------------
# Pure-JAX reference (lax conv) with matching bf16 operand rounding
# ----------------------------------------------------------------------------
def _ref_forward(pred_monoFromMem, params, *, compute_dtype=jnp.bfloat16):
    B, H, W, C = pred_monoFromMem.shape
    x = jnp.transpose(pred_monoFromMem, (0, 3, 1, 2))
    x = x.reshape(B, C * _SLICING_FACTOR, H // _SLICING_FACTOR, W)

    def conv(x, w, b):
        y = lax.conv_general_dilated(
            x.astype(compute_dtype).astype(jnp.float32),
            w.astype(compute_dtype).astype(jnp.float32),
            window_strides=(2, 2), padding="VALID",
            dimension_numbers=("NCHW", "OIHW", "NCHW"),
            precision=lax.Precision.HIGHEST)
        return y + b.reshape(1, -1, 1, 1)

    o1 = conv(x, params["w1"], params["b1"])
    o1 = jnp.maximum(o1, _NEG_SLOPE * o1)
    o2 = conv(o1, params["w2"], params["b2"])
    return o2.reshape(B, -1), [o1]


# ----------------------------------------------------------------------------
# Deterministic parameter init (Kaiming-normal-style; synthetic, no checkpoint)
# ----------------------------------------------------------------------------
def init_params(key):
    k1, k2 = jax.random.split(key)
    fan_in = 16 * 2 * 2
    a = (2.0 / (1.0 + _NEG_SLOPE ** 2)) ** 0.5   # calculate_gain('leaky_relu', 0.2)
    std = (2.0 / ((1.0 + a ** 2) * fan_in)) ** 0.5
    return {
        "w1": std * jax.random.normal(k1, (16, 16, 2, 2), dtype=jnp.float32),
        "b1": jnp.zeros((16,), dtype=jnp.float32),
        "w2": std * jax.random.normal(k2, (16, 16, 2, 2), dtype=jnp.float32),
        "b2": jnp.zeros((16,), dtype=jnp.float32),
    }


if __name__ == "__main__":
    key = jax.random.PRNGKey(0)
    kx, kp = jax.random.split(key)

    # Input: (B, H, W, C) = (2, 128, 32, 1); after slicing -> (2, 16, 8, 32)
    x = jax.random.normal(kx, (2, 128, 32, 1), dtype=jnp.float32)
    params = init_params(kp)

    fwd = jax.jit(downsample_cnn_forward)
    out_flat, skips = fwd(x, params)
    out_flat = jax.block_until_ready(out_flat)
    skips = [jax.block_until_ready(s) for s in skips]

    ref_flat, ref_skips = _ref_forward(x, params)

    assert out_flat.shape == (2, 16 * 2 * 8), out_flat.shape
    assert len(skips) == 1 and skips[0].shape == (2, 16, 4, 16), skips[0].shape
    # bf16 operands (same rounding in kernel and reference), f32 accumulation:
    # remaining difference is accumulation-order noise only.
    assert jnp.allclose(out_flat, ref_flat, rtol=2e-3, atol=2e-3), \
        float(jnp.max(jnp.abs(out_flat - ref_flat)))
    assert jnp.allclose(skips[0], ref_skips[0], rtol=2e-3, atol=2e-3), \
        float(jnp.max(jnp.abs(skips[0] - ref_skips[0])))

    print("KERNEL_OK")
</pallas_src>

<mosaic_0001>
module attributes {stable_mosaic.version = 11 : i64} {
  func.func @_fused_downsample_kernel(%arg0: i32, %arg1: memref<4x64x32xbf16, #tpu.memory_space<vmem>>, %arg2: memref<16x128xbf16, #tpu.memory_space<vmem>>, %arg3: memref<16x2xf32, #tpu.memory_space<vmem>>, %arg4: memref<16x32xf32, #tpu.memory_space<vmem>>, %arg5: memref<4x16x32xf32, #tpu.memory_space<vmem>>, %arg6: memref<64x32xbf16, #tpu.memory_space<vmem>>) attributes {dimension_semantics = [#tpu.dimension_semantics<parallel>], iteration_bounds = array<i64: 1>, scalar_prefetch = 0 : i64, scratch_operands = 1 : i64, tpu.core_type = #tpu.core_type<tc>, window_params = [{transform_indices = @transform_0, window_bounds = array<i64: 4, 64, 32>}, {pipeline_mode = #tpu.pipeline_mode<synchronous>, transform_indices = @transform_1, window_bounds = array<i64: 16, 128>}, {pipeline_mode = #tpu.pipeline_mode<synchronous>, transform_indices = @transform_2, window_bounds = array<i64: 16, 2>}, {transform_indices = @transform_3, window_bounds = array<i64: 16, 32>}, {transform_indices = @transform_4, window_bounds = array<i64: 4, 16, 32>}]} {
    %c0 = arith.constant 0 : index
    %c0_0 = arith.constant 0 : index
    %0 = vector.load %arg2[%c0, %c0_0] : memref<16x128xbf16, #tpu.memory_space<vmem>>, vector<16x64xbf16>
    %c0_1 = arith.constant 0 : index
    %c64 = arith.constant 64 : index
    %1 = vector.load %arg2[%c0_1, %c64] : memref<16x128xbf16, #tpu.memory_space<vmem>>, vector<16x64xbf16>
    %c0_2 = arith.constant 0 : index
    %c0_3 = arith.constant 0 : index
    %2 = vector.load %arg3[%c0_2, %c0_3] : memref<16x2xf32, #tpu.memory_space<vmem>>, vector<16x1xf32>
    %c0_4 = arith.constant 0 : index
    %c1 = arith.constant 1 : index
    %3 = vector.load %arg3[%c0_4, %c1] : memref<16x2xf32, #tpu.memory_space<vmem>>, vector<16x1xf32>
    %c0_5 = arith.constant 0 : index
    %c0_6 = arith.constant 0 : index
    %c0_7 = arith.constant 0 : index
    %4 = vector.load %arg1[%c0_5, %c0_6, %c0_7] : memref<4x64x32xbf16, #tpu.memory_space<vmem>>, vector<1x64x32xbf16>
    %5 = vector.shape_cast %4 : vector<1x64x32xbf16> to vector<64x32xbf16>
    %cst = arith.constant dense<0.000000e+00> : vector<16x32xf32>
    %6 = tpu.matmul %0, %5, %cst {dimension_numbers = #tpu.dot_dimension_numbers<[1], [0], [0], [1], [0, 0, 1, 1], [], []>} : vector<16x64xbf16>, vector<64x32xbf16>, vector<16x32xf32> -> vector<16x32xf32>
    %7 = vector.broadcast %2 : vector<16x1xf32> to vector<16x32xf32>
    %8 = arith.addf %6, %7 : vector<16x32xf32>
    %cst_8 = arith.constant 2.000000e-01 : f32
    %9 = vector.broadcast %cst_8 : f32 to vector<16x32xf32>
    %10 = arith.mulf %9, %8 : vector<16x32xf32>
    %11 = arith.maximumf %8, %10 : vector<16x32xf32>
    %c0_9 = arith.constant 0 : index
    %c0_10 = arith.constant 0 : index
    %c0_11 = arith.constant 0 : index
    %12 = vector.load %arg5[%c0_9, %c0_10, %c0_11] : memref<4x16x32xf32, #tpu.memory_space<vmem>>, vector<1x16x32xf32>
    %13 = vector.shape_cast %12 : vector<1x16x32xf32> to vector<16x32xf32>
    %14 = vector.shape_cast %11 : vector<16x32xf32> to vector<1x16x32xf32>
    tpu.vector_store %arg5[%c0_9, %c0_10, %c0_11], %14 {strides = array<i32>} : memref<4x16x32xf32, #tpu.memory_space<vmem>>, vector<1x16x32xf32>,
    %15 = arith.truncf %11 : vector<16x32xf32> to vector<16x32xbf16>
    %c0_12 = arith.constant 0 : index
    %c0_13 = arith.constant 0 : index
    %16 = vector.load %arg6[%c0_12, %c0_13] : memref<64x32xbf16, #tpu.memory_space<vmem>>, vector<16x32xbf16>
    tpu.vector_store %arg6[%c0_12, %c0_13], %15 {strides = array<i32>} : memref<64x32xbf16, #tpu.memory_space<vmem>>, vector<16x32xbf16>,
    %c1_14 = arith.constant 1 : index
    %c0_15 = arith.constant 0 : index
    %c0_16 = arith.constant 0 : index
    %17 = vector.load %arg1[%c1_14, %c0_15, %c0_16] : memref<4x64x32xbf16, #tpu.memory_space<vmem>>, vector<1x64x32xbf16>
    %18 = vector.shape_cast %17 : vector<1x64x32xbf16> to vector<64x32xbf16>
    %cst_17 = arith.constant dense<0.000000e+00> : vector<16x32xf32>
    %19 = tpu.matmul %0, %18, %cst_17 {dimension_numbers = #tpu.dot_dimension_numbers<[1], [0], [0], [1], [0, 0, 1, 1], [], []>} : vector<16x64xbf16>, vector<64x32xbf16>, vector<16x32xf32> -> vector<16x32xf32>
    %20 = vector.broadcast %2 : vector<16x1xf32> to vector<16x32xf32>
    %21 = arith.addf %19, %20 : vector<16x32xf32>
    %cst_18 = arith.constant 2.000000e-01 : f32
    %22 = vector.broadcast %cst_18 : f32 to vector<16x32xf32>
    %23 = arith.mulf %22, %21 : vector<16x32xf32>
    %24 = arith.maximumf %21, %23 : vector<16x32xf32>
    %c1_19 = arith.constant 1 : index
    %c0_20 = arith.constant 0 : index
    %c0_21 = arith.constant 0 : index
    %25 = vector.load %arg5[%c1_19, %c0_20, %c0_21] : memref<4x16x32xf32, #tpu.memory_space<vmem>>, vector<1x16x32xf32>
    %26 = vector.shape_cast %25 : vector<1x16x32xf32> to vector<16x32xf32>
    %27 = vector.shape_cast %24 : vector<16x32xf32> to vector<1x16x32xf32>
    tpu.vector_store %arg5[%c1_19, %c0_20, %c0_21], %27 {strides = array<i32>} : memref<4x16x32xf32, #tpu.memory_space<vmem>>, vector<1x16x32xf32>,
    %28 = arith.truncf %24 : vector<16x32xf32> to vector<16x32xbf16>
    %c16 = arith.constant 16 : index
    %c0_22 = arith.constant 0 : index
    %29 = vector.load %arg6[%c16, %c0_22] : memref<64x32xbf16, #tpu.memory_space<vmem>>, vector<16x32xbf16>
    tpu.vector_store %arg6[%c16, %c0_22], %28 {strides = array<i32>} : memref<64x32xbf16, #tpu.memory_space<vmem>>, vector<16x32xbf16>,
    %c2 = arith.constant 2 : index
    %c0_23 = arith.constant 0 : index
    %c0_24 = arith.constant 0 : index
    %30 = vector.load %arg1[%c2, %c0_23, %c0_24] : memref<4x64x32xbf16, #tpu.memory_space<vmem>>, vector<1x64x32xbf16>
    %31 = vector.shape_cast %30 : vector<1x64x32xbf16> to vector<64x32xbf16>
    %cst_25 = arith.constant dense<0.000000e+00> : vector<16x32xf32>
    %32 = tpu.matmul %0, %31, %cst_25 {dimension_numbers = #tpu.dot_dimension_numbers<[1], [0], [0], [1], [0, 0, 1, 1], [], []>} : vector<16x64xbf16>, vector<64x32xbf16>, vector<16x32xf32> -> vector<16x32xf32>
    %33 = vector.broadcast %2 : vector<16x1xf32> to vector<16x32xf32>
    %34 = arith.addf %32, %33 : vector<16x32xf32>
    %cst_26 = arith.constant 2.000000e-01 : f32
    %35 = vector.broadcast %cst_26 : f32 to vector<16x32xf32>
    %36 = arith.mulf %35, %34 : vector<16x32xf32>
    %37 = arith.maximumf %34, %36 : vector<16x32xf32>
    %c2_27 = arith.constant 2 : index
    %c0_28 = arith.constant 0 : index
    %c0_29 = arith.constant 0 : index
    %38 = vector.load %arg5[%c2_27, %c0_28, %c0_29] : memref<4x16x32xf32, #tpu.memory_space<vmem>>, vector<1x16x32xf32>
    %39 = vector.shape_cast %38 : vector<1x16x32xf32> to vector<16x32xf32>
    %40 = vector.shape_cast %37 : vector<16x32xf32> to vector<1x16x32xf32>
    tpu.vector_store %arg5[%c2_27, %c0_28, %c0_29], %40 {strides = array<i32>} : memref<4x16x32xf32, #tpu.memory_space<vmem>>, vector<1x16x32xf32>,
    %41 = arith.truncf %37 : vector<16x32xf32> to vector<16x32xbf16>
    %c32 = arith.constant 32 : index
    %c0_30 = arith.constant 0 : index
    %42 = vector.load %arg6[%c32, %c0_30] : memref<64x32xbf16, #tpu.memory_space<vmem>>, vector<16x32xbf16>
    tpu.vector_store %arg6[%c32, %c0_30], %41 {strides = array<i32>} : memref<64x32xbf16, #tpu.memory_space<vmem>>, vector<16x32xbf16>,
    %c3 = arith.constant 3 : index
    %c0_31 = arith.constant 0 : index
    %c0_32 = arith.constant 0 : index
    %43 = vector.load %arg1[%c3, %c0_31, %c0_32] : memref<4x64x32xbf16, #tpu.memory_space<vmem>>, vector<1x64x32xbf16>
    %44 = vector.shape_cast %43 : vector<1x64x32xbf16> to vector<64x32xbf16>
    %cst_33 = arith.constant dense<0.000000e+00> : vector<16x32xf32>
    %45 = tpu.matmul %0, %44, %cst_33 {dimension_numbers = #tpu.dot_dimension_numbers<[1], [0], [0], [1], [0, 0, 1, 1], [], []>} : vector<16x64xbf16>, vector<64x32xbf16>, vector<16x32xf32> -> vector<16x32xf32>
    %46 = vector.broadcast %2 : vector<16x1xf32> to vector<16x32xf32>
    %47 = arith.addf %45, %46 : vector<16x32xf32>
    %cst_34 = arith.constant 2.000000e-01 : f32
    %48 = vector.broadcast %cst_34 : f32 to vector<16x32xf32>
    %49 = arith.mulf %48, %47 : vector<16x32xf32>
    %50 = arith.maximumf %47, %49 : vector<16x32xf32>
    %c3_35 = arith.constant 3 : index
    %c0_36 = arith.constant 0 : index
    %c0_37 = arith.constant 0 : index
    %51 = vector.load %arg5[%c3_35, %c0_36, %c0_37] : memref<4x16x32xf32, #tpu.memory_space<vmem>>, vector<1x16x32xf32>
    %52 = vector.shape_cast %51 : vector<1x16x32xf32> to vector<16x32xf32>
    %53 = vector.shape_cast %50 : vector<16x32xf32> to vector<1x16x32xf32>
    tpu.vector_store %arg5[%c3_35, %c0_36, %c0_37], %53 {strides = array<i32>} : memref<4x16x32xf32, #tpu.memory_space<vmem>>, vector<1x16x32xf32>,
    %54 = arith.truncf %50 : vector<16x32xf32> to vector<16x32xbf16>
    %c48 = arith.constant 48 : index
    %c0_38 = arith.constant 0 : index
    %55 = vector.load %arg6[%c48, %c0_38] : memref<64x32xbf16, #tpu.memory_space<vmem>>, vector<16x32xbf16>
    tpu.vector_store %arg6[%c48, %c0_38], %54 {strides = array<i32>} : memref<64x32xbf16, #tpu.memory_space<vmem>>, vector<16x32xbf16>,
    %c0_39 = arith.constant 0 : index
    %c0_40 = arith.constant 0 : index
    %56 = vector.load %arg6[%c0_39, %c0_40] : memref<64x32xbf16, #tpu.memory_space<vmem>>, vector<64x32xbf16>
    %cst_41 = arith.constant dense<0.000000e+00> : vector<16x32xf32>
    %57 = tpu.matmul %1, %56, %cst_41 {dimension_numbers = #tpu.dot_dimension_numbers<[1], [0], [0], [1], [0, 0, 1, 1], [], []>} : vector<16x64xbf16>, vector<64x32xbf16>, vector<16x32xf32> -> vector<16x32xf32>
    %58 = vector.broadcast %3 : vector<16x1xf32> to vector<16x32xf32>
    %59 = arith.addf %57, %58 : vector<16x32xf32>
    %c0_42 = arith.constant 0 : index
    %c0_43 = arith.constant 0 : index
    %60 = vector.load %arg4[%c0_42, %c0_43] : memref<16x32xf32, #tpu.memory_space<vmem>>, vector<16x32xf32>
    tpu.vector_store %arg4[%c0_42, %c0_43], %59 {strides = array<i32>} : memref<16x32xf32, #tpu.memory_space<vmem>>, vector<16x32xf32>,
    return
  }
  func.func @transform_0(%arg0: i32) -> (i32, i32, i32) {
    %c0_i32 = arith.constant 0 : i32
    %c0_i32_0 = arith.constant 0 : i32
    %c0_i32_1 = arith.constant 0 : i32
    return %c0_i32, %c0_i32_0, %arg0 : i32, i32, i32
  }
  func.func @transform_1(%arg0: i32) -> (i32, i32) {
    %c0_i32 = arith.constant 0 : i32
    %c0_i32_0 = arith.constant 0 : i32
    %c0_i32_1 = arith.constant 0 : i32
    return %c0_i32, %c0_i32_0 : i32, i32
  }
  func.func @transform_2(%arg0: i32) -> (i32, i32) {
    %c0_i32 = arith.constant 0 : i32
    %c0_i32_0 = arith.constant 0 : i32
    %c0_i32_1 = arith.constant 0 : i32
    return %c0_i32, %c0_i32_0 : i32, i32
  }
  func.func @transform_3(%arg0: i32) -> (i32, i32) {
    %c0_i32 = arith.constant 0 : i32
    %c0_i32_0 = arith.constant 0 : i32
    return %c0_i32, %arg0 : i32, i32
  }
  func.func @transform_4(%arg0: i32) -> (i32, i32, i32) {
    %c0_i32 = arith.constant 0 : i32
    %c0_i32_0 = arith.constant 0 : i32
    %c0_i32_1 = arith.constant 0 : i32
    return %c0_i32, %c0_i32_0, %arg0 : i32, i32, i32
  }
}

</mosaic_0001>

<bundles_post_ra>
// kernel: downsample_cnn_forward.1
= control target key start
LH: loop header
LB: loop body
LE: loop exit
PB: predicated region body
PF: predicated region fallthrough
CT: control target
= control target key end

     0   :  { %v601_v0 = vmov 0.0   ;;  %vm602_vm0 = vmmov 0   ;;  %v603_v4 = vmov 0   ;;  %s604_s5 = smov 64   ;;  %vm68_vm1 = vcmask 523264   ;;  %s767_s0 = inlined_call_operand.vmem [shape: bf16[4,64,32], index: 0, kind: input, shape index: {}]   ;;  %s768_s1 = inlined_call_operand.vmem [shape: bf16[16,128], index: 1, kind: input, shape index: {}]   ;;  %s769_s2 = inlined_call_operand.vmem [shape: f32[16,2], index: 2, kind: input, shape index: {}]   ;;  %s770_s4 = inlined_call_operand.vmem [shape: f32[4,16,32], index: 4, kind: output, shape index: {1}]   ;;  %s771_s3 = inlined_call_operand.vmem [shape: f32[16,32], index: 3, kind: output, shape index: {0}]  }
   0x1   :  { %516 = vmatprep.subr.bf16.mxu0 %v601_v0  ;;  %528 = vmatprep.subr.bf16.mxu1 %v601_v0  ;;  %v584_v1 = vld [vmem:[%s767_s0] sm:$0xff]   ;;  %v586_v3 = vld [vmem:[%s767_s0 + $0x8] sm:$0xff]   ;;  %v588_v6 = vld [vmem:[%s767_s0 + $0x10] sm:$0xff]   ;;  %v605_v21 = vmov 1   ;;  %vm117_vm2 = vcmask 261120  }
   0x2   :  { %v585_v2 = vld [vmem:[%s767_s0 + $0x20] sm:$0xff]   ;;  %524 = vmatprep.mubr.msk.bf16.mxu0 %vm602_vm0, %v601_v0  ;;  %536 = vmatprep.mubr.msk.bf16.mxu1 %vm602_vm0, %v601_v0  ;;  %v587_v5 = vld [vmem:[%s767_s0 + $0x28] sm:$0xff]   ;;  %v589_v7 = vld [vmem:[%s767_s0 + $0x30] sm:$0xff]  }
   0x3   :  { %517 = vmatpush3.bf16.msra.mxu0 %v584_v1  ;;  %581 = vset.pattern.permute.xlu0 %v603_v4  ;;  %v592_v8 = vld [vmem:[%s768_s1] sm:$0xff]   ;;  %v590_v9 = vld [vmem:[%s767_s0 + $0x18] sm:$0xff]   ;;  %v595_v13 = vld [vmem:[%s767_s0 + $0x48] sm:$0xff]  }
   0x4   :  { %529 = vmatpush3.bf16.msra.mxu1 %v585_v2  ;;  %518 = vmatprep.subr.bf16.mxu0 %v601_v0  ;;  %v591_v10 = vld [vmem:[%s767_s0 + $0x38] sm:$0xff]   ;;  %v593_v11 = vld [vmem:[%s767_s0 + $0x40] sm:$0xff]   ;;  %v596_v15 = vld [vmem:[%s767_s0 + $0x68] sm:$0xff]  }
   0x5   :  { %530 = vmatprep.subr.bf16.mxu1 %v601_v0  ;;  %383 = vrot.lane.b32.xlu1 %v592_v8, %s604_s5  ;;  %v594_v12 = vld [vmem:[%s767_s0 + $0x60] sm:$0xff]   ;;  %v597_v16 = vld [vmem:[%s767_s0 + $0x50] sm:$0xff]   ;;  %v20_v17 = vld [vmem:[%s769_s2 + $0x8] sm:$0xff] }
   0x6   :  { %v19_v14 = vld [vmem:[%s769_s2] sm:$0xff]  ;;  %v598_v18 = vld [vmem:[%s767_s0 + $0x70] sm:$0xff]   ;;  %v599_v19 = vld [vmem:[%s767_s0 + $0x58] sm:$0xff]   ;;  %582 = vset.pattern.permute.xlu1 %v605_v21 }
   0x7   :  { %519 = vmatpush3.bf16.msra.mxu0 %v586_v3  ;;  %31 = vperm.xlu0 %581, %v19_v14   ;;  %v600_v20 = vld [vmem:[%s767_s0 + $0x78] sm:$0xff]  }
   0x8   :  { %531 = vmatpush3.bf16.msra.mxu1 %v587_v5  ;;  %520 = vmatprep.subr.bf16.mxu0 %v601_v0 }
   0x9   :  { %532 = vmatprep.subr.bf16.mxu1 %v601_v0  ;;  %376 = vperm.xlu1 %582, %v19_v14  }
   0xb   :  { %521 = vmatpush3.bf16.msra.mxu0 %v588_v6  ;;  %36 = vperm.xlu0 %581, %v20_v17  }
   0xc   :  { %533 = vmatpush3.bf16.msra.mxu1 %v589_v7  ;;  %522 = vmatprep.subr.bf16.mxu0 %v601_v0 }
   0xd   :  { %534 = vmatprep.subr.bf16.mxu1 %v601_v0 }
   0xf   :  { %523 = vmatpush3.bf16.msra.mxu0 %v590_v9  ;;  %583 = vset.pattern.permute.xlu0 %v605_v21 }
  0x10   :  { %535 = vmatpush3.bf16.msra.mxu1 %v591_v10  ;;  %540 = vmatprep.subr.bf16.mxu0 %v601_v0 }
  0x11   :  { %552 = vmatprep.subr.bf16.mxu1 %v601_v0  ;;  %380 = vperm.xlu0 %583, %v20_v17  }
  0x12   :  { %525 = vmatmul.mubr.msk.bf16.vlgmr.msra.gmra.mrb[0].mxu0 %vm68_vm1, %v592_v8 }
  0x13   :  { %537 = vmatmul.mubr.msk.bf16.vlgmr.msra.gmra.mrb[0].mxu1 %vm68_vm1, %v592_v8  ;;  %541 = vmatpush3.bf16.msra.mxu0 %v593_v11 }
  0x14   :  { %553 = vmatpush3.bf16.msra.mxu1 %v594_v12  ;;  %542 = vmatprep.subr.bf16.mxu0 %v601_v0 }
  0x15   :  { %554 = vmatprep.subr.bf16.mxu1 %v601_v0  ;;  %548 = vmatprep.mubr.msk.bf16.mxu0 %vm602_vm0, %v601_v0 }
  0x16   :  { %560 = vmatprep.mubr.msk.bf16.mxu1 %vm602_vm0, %v601_v0 }
  0x17   :  { %543 = vmatpush3.bf16.msra.mxu0 %v595_v13 }
  0x18   :  { %555 = vmatpush3.bf16.msra.mxu1 %v596_v15  ;;  %544 = vmatprep.subr.bf16.mxu0 %v601_v0 }
  0x19   :  { %556 = vmatprep.subr.bf16.mxu1 %v601_v0 }
  0x1b   :  { %545 = vmatpush3.bf16.msra.mxu0 %v597_v16 }
  0x1c   :  { %557 = vmatpush3.bf16.msra.mxu1 %v598_v18  ;;  %546 = vmatprep.subr.bf16.mxu0 %v601_v0 }
  0x1d   :  { %558 = vmatprep.subr.bf16.mxu1 %v601_v0 }
  0x1f   :  { %547 = vmatpush3.bf16.msra.mxu0 %v599_v19 }
  0x20   :  { %559 = vmatpush3.bf16.msra.mxu1 %v600_v20  ;;  %564 = vmatprep.subr.bf16.mxu0 %v601_v0 }
  0x22   :  { %549 = vmatmul.mubr.msk.bf16.vlgmr.msra.gmra.mrb[4].mxu0 %vm68_vm1, %v592_v8 }
  0x23   :  { %561 = vmatmul.mubr.msk.bf16.vlgmr.msra.gmra.mrb[4].mxu1 %vm68_vm1, %v592_v8  ;;  %572 = vmatprep.mubr.msk.bf16.mxu0 %vm602_vm0, %v601_v0 }
  0x77   :  { %v384_v9 = vpop.permute.xlu1 %383 }
  0x86   :  { %v32_v22 = vpop.permute.xlu0 %31 }
  0x88   :  { %v377_v10 = vpop.permute.xlu1 %376 }
  0x8a   :  { %v37_v24 = vpop.permute.xlu0 %36 }
  0x90   :  { %v381_v12 = vpop.permute.xlu0 %380 }
  0xe5   :  { %v106_v23 = vpop.f32.mrb[0].mxu0 }
  0xe6   :  { %v107_v25 = vadd.f32 %v106_v23, %v32_v22  ;;  %v526_v26 = vpop.f32.mrb[1].mxu0  ;;  %v189_v27 = vpop.f32.mrb[0].mxu1 }
  0xe7   :  { %v190_v28 = vadd.f32 %v189_v27, %v32_v22  ;;  %v109_v29 = vpop.f32.mrb[2].mxu0  ;;  %v538_v30 = vpop.f32.mrb[1].mxu1 }
  0xe8   :  { %v113_v31 = vmul.f32 0.2, %v107_v25  ;;  %v110_v32 = vadd.f32 %v109_v29, %v37_v24  ;;  %v527_v33 = vpop.f32.mrb[3].mxu0  ;;  %v192_v34 = vpop.f32.mrb[2].mxu1 }
  0xe9   :  { %v196_v35 = vmul.f32 0.2, %v190_v28  ;;  %v193_v36 = vadd.f32 %v192_v34, %v37_v24  ;;  %v539_v37 = vpop.f32.mrb[3].mxu1 }
  0xea   :  { %v115_v38 = vmax.f32 %v107_v25, %v113_v31  ;;  %v114_v39 = vmul.f32 0.2, %v110_v32 }
  0xeb   :  { %v198_v40 = vmax.f32 %v190_v28, %v196_v35  ;;  %v197_v41 = vmul.f32 0.2, %v193_v36 }
  0xec   :  { %118 = vst.msk [vmem:[%s770_s4] sm:$0xff] %vm117_vm2, %v115_v38  ;;  %v116_v42 = vmax.f32 %v110_v32, %v114_v39 }
  0xed   :  { %458 = vst.msk [vmem:[%s770_s4 + $0x10] sm:$0xff] %vm117_vm2, %v198_v40  ;;  %v199_v43 = vmax.f32 %v193_v36, %v197_v41 }
  0xee   :  { %119 = vst.msk [vmem:[%s770_s4 + $0x8] sm:$0xff] %vm117_vm2, %v116_v42  ;;  %v120_v44 = vpack.c.bf16 %v116_v42, %v115_v38 }
  0xef   :  { %459 = vst.msk [vmem:[%s770_s4 + $0x18] sm:$0xff] %vm117_vm2, %v199_v43  ;;  %v203_v45 = vpack.c.bf16 %v199_v43, %v198_v40 }
  0xf0   :  { %121 = vst.msk [vmem:[#allocation2] sm:$0xff] %vm117_vm2, %v120_v44 }
  0xf1   :  { %204 = vst.msk [vmem:[#allocation2 + $0x8] sm:$0xff] %vm117_vm2, %v203_v45 }
  0xf5   :  { %v272_v46 = vpop.f32.mrb[4].mxu0 }
  0xf6   :  { %v273_v47 = vadd.f32 %v272_v46, %v32_v22  ;;  %v355_v48 = vpop.f32.mrb[4].mxu1  ;;  %v550_v49 = vpop.f32.mrb[5].mxu0 }
  0xf7   :  { %v356_v50 = vadd.f32 %v355_v48, %v32_v22  ;;  %v562_v51 = vpop.f32.mrb[5].mxu1  ;;  %v275_v52 = vpop.f32.mrb[6].mxu0  ;;  %v371_v53 = vld [vmem:[#allocation2] sm:$0xff] }
  0xf8   :  { %v279_v54 = vmul.f32 0.2, %v273_v47  ;;  %v276_v55 = vadd.f32 %v275_v52, %v37_v24  ;;  %v358_v56 = vpop.f32.mrb[6].mxu1  ;;  %v551_v57 = vpop.f32.mrb[7].mxu0  ;;  %565 = vmatpush3.bf16.msra.mxu0 %v371_v53  ;;  %v372_v2 = vld [vmem:[#allocation2 + $0x8] sm:$0xff] }
  0xf9   :  { %v362_v58 = vmul.f32 0.2, %v356_v50  ;;  %v359_v59 = vadd.f32 %v358_v56, %v37_v24  ;;  %v563_v60 = vpop.f32.mrb[7].mxu1  ;;  %566 = vmatprep.subr.bf16.mxu0 %v601_v0 }
  0xfa   :  { %v281_v61 = vmax.f32 %v273_v47, %v279_v54  ;;  %v280_v62 = vmul.f32 0.2, %v276_v55 }
  0xfb   :  { %v364_v63 = vmax.f32 %v356_v50, %v362_v58  ;;  %v363_v1 = vmul.f32 0.2, %v359_v59 }
  0xfc   :  { %473 = vst.msk [vmem:[%s770_s4 + $0x20] sm:$0xff] %vm117_vm2, %v281_v61  ;;  %v282_v3 = vmax.f32 %v276_v55, %v280_v62  ;;  %567 = vmatpush3.bf16.msra.mxu0 %v372_v2 }
  0xfd   :  { %488 = vst.msk [vmem:[%s770_s4 + $0x30] sm:$0xff] %vm117_vm2, %v364_v63  ;;  %v365_v4 = vmax.f32 %v359_v59, %v363_v1  ;;  %568 = vmatprep.subr.bf16.mxu0 %v601_v0 }
  0xfe   :  { %474 = vst.msk [vmem:[%s770_s4 + $0x28] sm:$0xff] %vm117_vm2, %v282_v3  ;;  %v286_v5 = vpack.c.bf16 %v282_v3, %v281_v61 }
  0xff   :  { %489 = vst.msk [vmem:[%s770_s4 + $0x38] sm:$0xff] %vm117_vm2, %v365_v4  ;;  %v369_v6 = vpack.c.bf16 %v365_v4, %v364_v63 }
 0x100   :  { %287 = vst.msk [vmem:[#allocation2 + $0x10] sm:$0xff] %vm117_vm2, %v286_v5 }
 0x101   :  { %370 = vst.msk [vmem:[#allocation2 + $0x18] sm:$0xff] %vm117_vm2, %v369_v6 }
 0x107   :  { %v373_v7 = vld [vmem:[#allocation2 + $0x10] sm:$0xff] }
 0x108   :  { %569 = vmatpush3.bf16.msra.mxu0 %v373_v7  ;;  %v374_v8 = vld [vmem:[#allocation2 + $0x18] sm:$0xff] }
 0x109   :  { %570 = vmatprep.subr.bf16.mxu0 %v601_v0 }
 0x10c   :  { %571 = vmatpush3.bf16.msra.mxu0 %v374_v8 }
 0x10f   :  { %573 = vmatmul.mubr.msk.bf16.vlgmr.msra.gmra.mrb[8].mxu0 %vm68_vm1, %v384_v9 }
 0x1e2   :  { %v422_v11 = vpop.f32.mrb[8].mxu0 }
 0x1e3   :  { %v423_v13 = vadd.f32 %v422_v11, %v377_v10  ;;  %v574_v14 = vpop.f32.mrb[9].mxu0 }
 0x1e4   :  { %v425_v15 = vpop.f32.mrb[10].mxu0 }
 0x1e5   :  { %429 = vst.msk [vmem:[%s771_s3] sm:$0xff] %vm117_vm2, %v423_v13  ;;  %v426_v16 = vadd.f32 %v425_v15, %v381_v12  ;;  %v575_v17 = vpop.f32.mrb[11].mxu0 }
 0x1e7   :  { %430 = vst.msk [vmem:[%s771_s3 + $0x8] sm:$0xff] %vm117_vm2, %v426_v16 }

</bundles_post_ra>
